<compile_context>
chip_gen: v7x
topology: tpu7x:2x2x1
jax: 0.10.0
libtpu: 0.0.40
codegen_flags: <defaults>
</compile_context>

<pallas_src>
import functools

import jax
import jax.numpy as jnp
from jax import lax
from jax.experimental import pallas as pl
from jax.experimental.pallas import tpu as pltpu

EPS = 1e-09
_LANE = 128
_SUBLANE = 8


def _round_up(x, m):
    return ((x + m - 1) // m) * m


# ----------------------------------------------------------------------------
# Hardware / sizing helpers
# ----------------------------------------------------------------------------
def _tpu_vmem_capacity_bytes():
    try:
        return int(pltpu.get_tpu_info().vmem_capacity_bytes)
    except Exception:
        return 64 << 20  # conservative fallback (v7x per-core VMEM)


def _default_block_budget_bytes(vmem_cap):
    # Live footprint of a (tm, Lp) f32 block is ~6x its nominal size
    # (2x in + 2x out buffers + ~2 f32 temporaries).  Budget ~28% of VMEM.
    return max(1 << 20, int(vmem_cap * 0.28) // 6)


def _vmem_limit_bytes(footprint_bytes, vmem_cap):
    limit = max(32 << 20, int(1.5 * footprint_bytes))
    return int(min(limit, int(0.85 * vmem_cap)))


def _choose_tm(M, row_bytes, block_budget):
    """Rows per block (fused path): a multiple of 8, or the whole batch."""
    rows = max(1, block_budget // max(row_bytes, 1))
    if rows >= M:
        tm = M
    else:
        tm = max(_SUBLANE, (rows // _SUBLANE) * _SUBLANE)
    # Guarantee >= 2 grid steps when the batch is big enough to split while
    # keeping the sublane dim a multiple of 8 — the M axis is the only one that
    # shards across v7x's two TensorCores under dimension_semantics=parallel.
    if tm >= M and M >= 2 * _SUBLANE:
        tm = max(_SUBLANE, ((M // 2) // _SUBLANE) * _SUBLANE)
    return min(tm, M)


# ----------------------------------------------------------------------------
# Fused path: whole (padded) row resident per grid step.
# ----------------------------------------------------------------------------
def _gln_fused_kernel(y_ref, g_ref, b_ref, o_ref, *, l_true, n_pad):
    yf = y_ref[...].astype(jnp.float32)        # (TM, Lp)
    g = g_ref[...].astype(jnp.float32)         # (1, Lp)
    b = b_ref[...].astype(jnp.float32)         # (1, Lp)

    inv_l = jnp.float32(1.0 / l_true)
    mean = jnp.sum(yf, axis=1, keepdims=True) * inv_l          # (TM, 1)
    centered = yf - mean
    sq = jnp.sum(centered * centered, axis=1, keepdims=True)   # (TM, 1)
    if n_pad:
        # Padded lanes are exactly zero, so their centered value is -mean and
        # each contributes mean**2 to sq.  Remove that analytically (no masks).
        sq = sq - jnp.float32(n_pad) * (mean * mean)
    var = jnp.maximum(sq * inv_l, 0.0)
    inv_std = lax.rsqrt(var + EPS)
    o_ref[...] = ((centered * inv_std) * g + b).astype(o_ref.dtype)


def _gln_fused(y2, g2, b2, l_true, n_pad, block_budget, vmem_cap):
    M, Lp = y2.shape
    row_bytes = Lp * 4
    tm = _choose_tm(M, row_bytes, block_budget)
    grid = (pl.cdiv(M, tm),)

    # gamma/beta never change across the grid: one buffer is enough when they
    # are big enough to matter.
    gb_mode = {}
    if Lp * 4 >= (1 << 20):
        gb_mode = dict(pipeline_mode=pl.Buffered(1))

    footprint = 6 * tm * row_bytes + 4 * Lp * 4
    kernel = functools.partial(_gln_fused_kernel, l_true=l_true, n_pad=n_pad)
    return pl.pallas_call(
        kernel,
        out_shape=jax.ShapeDtypeStruct((M, Lp), y2.dtype),
        grid_spec=pltpu.PrefetchScalarGridSpec(
            num_scalar_prefetch=0,
            grid=grid,
            in_specs=[
                pl.BlockSpec((tm, Lp), lambda m: (m, 0)),
                pl.BlockSpec((1, Lp), lambda m: (0, 0), **gb_mode),
                pl.BlockSpec((1, Lp), lambda m: (0, 0), **gb_mode),
            ],
            out_specs=pl.BlockSpec((tm, Lp), lambda m: (m, 0)),
        ),
        compiler_params=pltpu.CompilerParams(
            dimension_semantics=("parallel",),
            vmem_limit_bytes=_vmem_limit_bytes(footprint, vmem_cap),
        ),
    )(y2, g2, b2)


# ----------------------------------------------------------------------------
# L-tiled two-pass path (long rows): stats kernel + apply kernel.
# ----------------------------------------------------------------------------
def _gln_stats_kernel(y_ref, mean_ref, rstd_ref, sum_sc, sq_sc, *, l_true):
    l = pl.program_id(1)

    @pl.when(l == 0)
    def _():
        sum_sc[...] = jnp.zeros_like(sum_sc)
        sq_sc[...] = jnp.zeros_like(sq_sc)

    yf = y_ref[...].astype(jnp.float32)                        # (TM, TL)
    sum_sc[...] += jnp.sum(yf, axis=1, keepdims=True)
    sq_sc[...] += jnp.sum(yf * yf, axis=1, keepdims=True)

    @pl.when(l == pl.num_programs(1) - 1)
    def _():
        inv_l = jnp.float32(1.0 / l_true)
        mean = sum_sc[...] * inv_l
        # E[x^2] - E[x]^2 in f32; zero-padded lanes contribute to neither sum.
        var = jnp.maximum(sq_sc[...] * inv_l - mean * mean, 0.0)
        mean_ref[...] = mean
        rstd_ref[...] = lax.rsqrt(var + EPS)


def _gln_apply_kernel(y_ref, mean_ref, rstd_ref, g_ref, b_ref, o_ref):
    yf = y_ref[...].astype(jnp.float32)
    o_ref[...] = (
        (yf - mean_ref[...]) * rstd_ref[...] * g_ref[...].astype(jnp.float32)
        + b_ref[...].astype(jnp.float32)
    ).astype(o_ref.dtype)


def _gln_l_tiled(y2, g2, b2, l_true, block_budget, vmem_cap):
    M, Lp = y2.shape
    tm = M if M < _SUBLANE else _SUBLANE
    tl = max(_LANE, min(Lp, ((block_budget // max(tm * 4, 1)) // _LANE) * _LANE))
    grid = (pl.cdiv(M, tm), pl.cdiv(Lp, tl))
    block_bytes = tm * tl * 4
    vmem_limit = _vmem_limit_bytes(6 * block_bytes + 8 * tl * 4, vmem_cap)

    stats = pl.pallas_call(
        functools.partial(_gln_stats_kernel, l_true=l_true),
        out_shape=(
            jax.ShapeDtypeStruct((M, 1), jnp.float32),
            jax.ShapeDtypeStruct((M, 1), jnp.float32),
        ),
        grid_spec=pltpu.PrefetchScalarGridSpec(
            num_scalar_prefetch=0,
            grid=grid,
            in_specs=[pl.BlockSpec((tm, tl), lambda m, l: (m, l))],
            out_specs=[
                pl.BlockSpec((tm, 1), lambda m, l: (m, 0)),
                pl.BlockSpec((tm, 1), lambda m, l: (m, 0)),
            ],
            scratch_shapes=[
                pltpu.VMEM((tm, 1), jnp.float32),
                pltpu.VMEM((tm, 1), jnp.float32),
            ],
        ),
        compiler_params=pltpu.CompilerParams(
            dimension_semantics=("parallel", "arbitrary"),
            vmem_limit_bytes=vmem_limit,
        ),
    )(y2)
    mean, rstd = stats

    return pl.pallas_call(
        _gln_apply_kernel,
        out_shape=jax.ShapeDtypeStruct((M, Lp), y2.dtype),
        grid_spec=pltpu.PrefetchScalarGridSpec(
            num_scalar_prefetch=0,
            grid=grid,
            in_specs=[
                pl.BlockSpec((tm, tl), lambda m, l: (m, l)),
                pl.BlockSpec((tm, 1), lambda m, l: (m, 0)),
                pl.BlockSpec((tm, 1), lambda m, l: (m, 0)),
                pl.BlockSpec((1, tl), lambda m, l: (0, l)),
                pl.BlockSpec((1, tl), lambda m, l: (0, l)),
            ],
            out_specs=pl.BlockSpec((tm, tl), lambda m, l: (m, l)),
        ),
        compiler_params=pltpu.CompilerParams(
            dimension_semantics=("parallel", "parallel"),
            vmem_limit_bytes=vmem_limit,
        ),
    )(y2, mean, rstd, g2, b2)


# ----------------------------------------------------------------------------
# Public wrapper
# ----------------------------------------------------------------------------
def gln(y, gamma, beta, *, block_budget_bytes=None, force_l_tiled=False):
    """Global layer norm. y: [M, K, N]; gamma/beta: [1, 1, N]."""
    M, K, N = y.shape
    L = K * N
    Lp = _round_up(max(L, _LANE), _LANE)
    n_pad = Lp - L

    vmem_cap = _tpu_vmem_capacity_bytes()
    if block_budget_bytes is None:
        block_budget_bytes = _default_block_budget_bytes(vmem_cap)

    # Lane-dense layout: flatten (K, N) -> L and pad to a multiple of 128 so
    # lane reductions / stores stay unmasked; gamma/beta tiled + padded to match.
    y2 = y.reshape(M, L)
    g2 = jnp.tile(gamma.reshape(1, N), (1, K))
    b2 = jnp.tile(beta.reshape(1, N), (1, K))
    if n_pad:
        y2 = jnp.pad(y2, ((0, 0), (0, n_pad)))
        g2 = jnp.pad(g2, ((0, 0), (0, n_pad)))
        b2 = jnp.pad(b2, ((0, 0), (0, n_pad)))

    row_bytes = Lp * 4                       # f32 working set per batch row
    min_tm = M if M < _SUBLANE else _SUBLANE
    fused_ok = (not force_l_tiled) and (min_tm * row_bytes <= block_budget_bytes)

    if fused_ok:
        out2 = _gln_fused(y2, g2, b2, L, n_pad, block_budget_bytes, vmem_cap)
    else:
        out2 = _gln_l_tiled(y2, g2, b2, L, block_budget_bytes, vmem_cap)

    return out2[:, :L].reshape(M, K, N)


def gln_reference(y, gamma, beta):
    """Pure-JAX reference mirroring the PyTorch forward exactly."""
    mean = jnp.mean(jnp.mean(y, axis=1, keepdims=True), axis=2, keepdims=True)
    var = jnp.mean(
        jnp.mean((y - mean) ** 2, axis=1, keepdims=True), axis=2, keepdims=True
    )
    return gamma * (y - mean) / jnp.power(var + EPS, 0.5) + beta


if __name__ == "__main__":
    # 1) Module-sized smoke test (fused whole-row path, L = 128 exactly).
    M, K, N = 2, 16, 8
    y = jax.random.normal(jax.random.PRNGKey(0), (M, K, N), dtype=jnp.float32)
    gamma = jnp.ones((1, 1, N), dtype=jnp.float32)   # gLN.reset_parameters()
    beta = jnp.zeros((1, 1, N), dtype=jnp.float32)
    out = jax.block_until_ready(gln(y, gamma, beta))
    ref = gln_reference(y, gamma, beta)
    assert out.shape == (M, K, N)
    assert jnp.allclose(out, ref, atol=1e-5, rtol=1e-5), (
        f"fused path max abs err = {jnp.max(jnp.abs(out - ref))}"
    )

    # 2) Non-128-divisible K*N (exercises lane padding + exact pad correction).
    M2, K2, N2 = 4, 12, 10                   # L = 120 -> padded to 128
    k1, k2, k3 = jax.random.split(jax.random.PRNGKey(1), 3)
    y_b = jax.random.normal(k1, (M2, K2, N2), dtype=jnp.float32)
    g_b = jax.random.normal(k2, (1, 1, N2), dtype=jnp.float32)
    b_b = jax.random.normal(k3, (1, 1, N2), dtype=jnp.float32)
    out_b = jax.block_until_ready(gln(y_b, g_b, b_b))
    ref_b = gln_reference(y_b, g_b, b_b)
    assert jnp.allclose(out_b, ref_b, atol=1e-5, rtol=1e-5), (
        f"padded path max abs err = {jnp.max(jnp.abs(out_b - ref_b))}"
    )

    # 3) Force the L-tiled two-pass path (long-row fallback) at a small shape.
    M3, K3, N3 = 16, 32, 12                  # L = 384, tiled at tl = 128
    y_c = jax.random.normal(jax.random.PRNGKey(2), (M3, K3, N3), dtype=jnp.float32)
    g_c = jnp.ones((1, 1, N3), dtype=jnp.float32)
    b_c = jnp.zeros((1, 1, N3), dtype=jnp.float32)
    out_c = jax.block_until_ready(
        gln(y_c, g_c, b_c, block_budget_bytes=2048, force_l_tiled=True)
    )
    ref_c = gln_reference(y_c, g_c, b_c)
    assert jnp.allclose(out_c, ref_c, atol=1e-5, rtol=1e-5), (
        f"L-tiled path max abs err = {jnp.max(jnp.abs(out_c - ref_c))}"
    )

    print("KERNEL_OK")
</pallas_src>

<mosaic_0001>
module attributes {stable_mosaic.version = 11 : i64} {
  func.func @_gln_fused_kernel(%arg0: i32, %arg1: memref<2x128xf32, #tpu.memory_space<vmem>>, %arg2: memref<1x128xf32, #tpu.memory_space<vmem>>, %arg3: memref<1x128xf32, #tpu.memory_space<vmem>>, %arg4: memref<2x128xf32, #tpu.memory_space<vmem>>) attributes {dimension_semantics = [#tpu.dimension_semantics<parallel>], iteration_bounds = array<i64: 1>, scalar_prefetch = 0 : i64, scratch_operands = 0 : i64, tpu.core_type = #tpu.core_type<tc>, window_params = [{transform_indices = @transform_0, window_bounds = array<i64: 2, 128>}, {pipeline_mode = #tpu.pipeline_mode<synchronous>, transform_indices = @transform_1, window_bounds = array<i64: 1, 128>}, {pipeline_mode = #tpu.pipeline_mode<synchronous>, transform_indices = @transform_2, window_bounds = array<i64: 1, 128>}, {transform_indices = @transform_3, window_bounds = array<i64: 2, 128>}]} {
    %c0 = arith.constant 0 : index
    %c0_0 = arith.constant 0 : index
    %0 = vector.load %arg1[%c0, %c0_0] : memref<2x128xf32, #tpu.memory_space<vmem>>, vector<2x128xf32>
    %c0_1 = arith.constant 0 : index
    %c0_2 = arith.constant 0 : index
    %1 = vector.load %arg2[%c0_1, %c0_2] : memref<1x128xf32, #tpu.memory_space<vmem>>, vector<1x128xf32>
    %c0_3 = arith.constant 0 : index
    %c0_4 = arith.constant 0 : index
    %2 = vector.load %arg3[%c0_3, %c0_4] : memref<1x128xf32, #tpu.memory_space<vmem>>, vector<1x128xf32>
    %cst = arith.constant dense<0.000000e+00> : vector<2xf32>
    %3 = vector.multi_reduction <add>, %0, %cst [1] : vector<2x128xf32> to vector<2xf32>
    %4 = vector.shape_cast %3 : vector<2xf32> to vector<2x1xf32>
    %cst_5 = arith.constant 7.812500e-03 : f32
    %5 = vector.broadcast %cst_5 : f32 to vector<2x1xf32>
    %6 = arith.mulf %4, %5 : vector<2x1xf32>
    %7 = vector.broadcast %6 : vector<2x1xf32> to vector<2x128xf32>
    %8 = arith.subf %0, %7 : vector<2x128xf32>
    %9 = arith.mulf %8, %8 : vector<2x128xf32>
    %cst_6 = arith.constant dense<0.000000e+00> : vector<2xf32>
    %10 = vector.multi_reduction <add>, %9, %cst_6 [1] : vector<2x128xf32> to vector<2xf32>
    %11 = vector.shape_cast %10 : vector<2xf32> to vector<2x1xf32>
    %cst_7 = arith.constant 7.812500e-03 : f32
    %12 = vector.broadcast %cst_7 : f32 to vector<2x1xf32>
    %13 = arith.mulf %11, %12 : vector<2x1xf32>
    %cst_8 = arith.constant 0.000000e+00 : f32
    %14 = vector.broadcast %cst_8 : f32 to vector<2x1xf32>
    %15 = arith.maximumf %13, %14 : vector<2x1xf32>
    %cst_9 = arith.constant 9.99999971E-10 : f32
    %16 = vector.broadcast %cst_9 : f32 to vector<2x1xf32>
    %17 = arith.addf %15, %16 : vector<2x1xf32>
    %18 = math.rsqrt %17 : vector<2x1xf32>
    %19 = vector.broadcast %18 : vector<2x1xf32> to vector<2x128xf32>
    %20 = arith.mulf %8, %19 : vector<2x128xf32>
    %21 = vector.broadcast %1 : vector<1x128xf32> to vector<2x128xf32>
    %22 = arith.mulf %20, %21 : vector<2x128xf32>
    %23 = vector.broadcast %2 : vector<1x128xf32> to vector<2x128xf32>
    %24 = arith.addf %22, %23 : vector<2x128xf32>
    %c0_10 = arith.constant 0 : index
    %c0_11 = arith.constant 0 : index
    %25 = vector.load %arg4[%c0_10, %c0_11] : memref<2x128xf32, #tpu.memory_space<vmem>>, vector<2x128xf32>
    tpu.vector_store %arg4[%c0_10, %c0_11], %24 {strides = array<i32>} : memref<2x128xf32, #tpu.memory_space<vmem>>, vector<2x128xf32>,
    return
  }
  func.func @transform_0(%arg0: i32) -> (i32, i32) {
    %c0_i32 = arith.constant 0 : i32
    %c0_i32_0 = arith.constant 0 : i32
    return %arg0, %c0_i32 : i32, i32
  }
  func.func @transform_1(%arg0: i32) -> (i32, i32) {
    %c0_i32 = arith.constant 0 : i32
    %c0_i32_0 = arith.constant 0 : i32
    %c0_i32_1 = arith.constant 0 : i32
    return %c0_i32, %c0_i32_0 : i32, i32
  }
  func.func @transform_2(%arg0: i32) -> (i32, i32) {
    %c0_i32 = arith.constant 0 : i32
    %c0_i32_0 = arith.constant 0 : i32
    %c0_i32_1 = arith.constant 0 : i32
    return %c0_i32, %c0_i32_0 : i32, i32
  }
  func.func @transform_3(%arg0: i32) -> (i32, i32) {
    %c0_i32 = arith.constant 0 : i32
    %c0_i32_0 = arith.constant 0 : i32
    return %arg0, %c0_i32 : i32, i32
  }
}

</mosaic_0001>

<bundles_post_ra>
// kernel: tpu_custom_call.1
= control target key start
LH: loop header
LB: loop body
LE: loop exit
PB: predicated region body
PF: predicated region fallthrough
CT: control target
= control target key end

     0   :  { %8 = vsyncpa [#allocation3], 0  ;;  %s181_s0 = inlined_call_operand.hbm [shape: f32[2,128], index: 0, kind: input, shape index: {}]   ;;  %s182_s1 = inlined_call_operand.vmem [shape: f32[1,128], index: 1, kind: input, shape index: {}]   ;;  %s183_s2 = inlined_call_operand.vmem [shape: f32[1,128], index: 2, kind: input, shape index: {}]   ;;  %s184_s3 = inlined_call_operand.hbm [shape: f32[2,128], index: 3, kind: output, shape index: {}]  }
   0x1   :  { %9 = vsyncpa [#allocation4], 0  ;;  %s129_s12 = smov [#allocation2]   ;;  %s81_s16 = scalar_lea.hbm %s181_s0, 32 }
   0x2   :  { %s16_s13 = sshll.u32 %s129_s12, 4  ;;  %p82_p0 = scmp.ne.s32.totalorder %s181_s0, %s81_s16  ;;  %s17_s13 = int_to_ptr.vmem [resolvable:$true] %s16_s13 }
   0x3   :  { %p85_p1 = scmp.lt.u32.totalorder %s81_s16, %s181_s0 }
   0x5   :  { %p87_p2 = pnand %p85_p1, %p82_p0 }
   0x7   :  { %90 = shalt.err (!%p87_p2)
}
   0x8   :  { %s91_s21 = scalar_lea.vmem %s17_s13, 32  ;;  %p96_p4 = scmp.lt.s32.totalorder %s17_s13, %s17_s13 }
   0x9   :  { %p92_p3 = scmp.ne.s32.totalorder %s17_s13, %s91_s21  ;;  %p97_p5 = scmp.lt.s32.totalorder %s91_s21, %s91_s21 }
   0xb   :  { %p98_p6 = por %p97_p5, %p96_p4 }
   0xd   :  { %p99_p7 = pnand %p98_p6, %p92_p3 }
   0xf   :  { %102 = shalt.err (!%p99_p7)
}
  0x10   :  { %19 = dma.hbm_to_vmem [thread:$0]  %s181_s0, 32, %s17_s13, [#allocation3]  }
  0x11   :  { %125 = dma.done.wait [#allocation3], 32  }
  0x12   :  { %126 = vsyncadd [#allocation3], 4294967264  ;;  %vm30_vm0 = vcmask 1041408   ;;  %v27_v0 = vld [vmem:[#allocation2] sm:$0x3]  ;;  %s130_s27 = smov [#allocation5]  }
  0x13   :  { %v31_v1 = vsel %vm30_vm0, %v27_v0, 0.0  ;;  %v75_v12 = vld [vmem:[%s182_s1] ss:$0 sm:$0xff]  ;;  %s66_s28 = sshll.u32 %s130_s27, 4  ;;  %s67_s28 = int_to_ptr.vmem [resolvable:$true] %s66_s28 }
  0x14   :  { %32 = vadd.xlane.f32.xlu0 %v31_v1  ;;  %v76_v14 = vld [vmem:[%s183_s2] ss:$0 sm:$0xff]  ;;  %s103_s29 = scalar_lea.vmem %s67_s28, 32  ;;  %p108_p9 = scmp.lt.s32.totalorder %s67_s28, %s67_s28 }
  0x15   :  { %p104_p8 = scmp.ne.s32.totalorder %s67_s28, %s103_s29  ;;  %p109_p10 = scmp.lt.s32.totalorder %s103_s29, %s103_s29 }
  0x17   :  { %p110_p11 = por %p109_p10, %p108_p9 }
  0x19   :  { %p111_p12 = pnand %p110_p11, %p104_p8 }
  0xa1   :  { %v33_v2 = vpop.xlane.xlu0 %32 }
  0xa2   :  { %v34_v3 = vmul.f32 0.0078125, %v33_v2 }
  0xa4   :  { %v35_v4 = vsub.f32 %v27_v0, %v34_v3 }
  0xa6   :  { %v36_v5 = vmul.f32 %v35_v4, %v35_v4 }
  0xa8   :  { %v37_v6 = vsel %vm30_vm0, %v36_v5, 0.0 }
  0xa9   :  { %38 = vadd.xlane.f32.xlu0 %v37_v6 }
 0x136   :  { %v39_v7 = vpop.xlane.xlu0 %38 }
 0x137   :  { %v40_v8 = vmul.f32 0.0078125, %v39_v7 }
 0x139   :  { %v41_v9 = vmax.f32 %v40_v8, 0.0 }
 0x13b   :  { %v42_v10 = vadd.f32 1e-09, %v41_v9 }
 0x13d   :  { %79 = vrsqrt.f32 %v42_v10 }
 0x147   :  { %v80_v11 = vpop.eup %79 }
 0x148   :  { %v44_v13 = vmul.f32 %v80_v11, %v35_v4 }
 0x14a   :  { %v51_v15 = vmul.f32 %v75_v12, %v44_v13 }
 0x14c   :  { %v58_v16 = vadd.f32 %v76_v14, %v51_v15 }
 0x14e   :  { %59 = vst [vmem:[#allocation5] sm:$0x3] %v58_v16 }
 0x14f   :  { %114 = shalt.err (!%p111_p12)
}
 0x150   :  { %s115_s4 = scalar_lea.hbm %s184_s3, 32 }
 0x151   :  { %p116_p13 = scmp.ne.s32.totalorder %s184_s3, %s115_s4  ;;  %p119_p0 = scmp.lt.u32.totalorder %s115_s4, %s184_s3 }
 0x153   :  { %p121_p1 = pnand %p119_p0, %p116_p13 }
 0x155   :  { %124 = shalt.err (!%p121_p1)
}
 0x156   :  { %69 = dma.vmem_to_hbm [thread:$0]  %s67_s28, 32, %s184_s3, [#allocation4]  }
 0x157   :  { %127 = dma.done.wait [#allocation4], 32  }
 0x158   :  { %128 = vsyncadd [#allocation4], 4294967264 }
 0x159   :  { %73 = vsyncpa [#allocation3], 1 }
 0x15a   :  { %74 = vsyncpa [#allocation4], 1 }

</bundles_post_ra>
